<compile_context>
chip_gen: v5e
topology: v5e:2x2
jax: 0.10.0
libtpu: 0.0.40
codegen_flags: <defaults>
</compile_context>

<pallas_src>
import functools

import jax
import jax.numpy as jnp
from jax.experimental import pallas as pl
from jax.experimental.pallas import tpu as pltpu


def _npair_loss_kernel(x_ref, out_ref, *, num_valid):
    """One grid step: tb n-pair groups in native (tb, N, D) layout."""
    c = pl.program_id(0)            # core ("parallel") axis
    b = pl.program_id(1)            # accumulation ("arbitrary") axis
    nb = pl.num_programs(1)
    tb, n_rows, _ = x_ref.shape

    @pl.when(b == 0)
    def _init():
        out_ref[...] = jnp.zeros_like(out_ref)

    anchor = x_ref[:, 0, :].astype(jnp.float32)            # (tb, D)
    pos = x_ref[:, 1, :].astype(jnp.float32)               # (tb, D)

    # Weight penalty: sum_d anchor^2 + pos^2
    wsum = jnp.sum(anchor * anchor + pos * pos, axis=-1, keepdims=True)    # (tb, 1)

    if n_rows > 2:
        dot_ap = jnp.sum(anchor * pos, axis=-1, keepdims=True)             # (tb, 1)
        # Unrolled over the (small, static) negatives axis; only ~2 f32
        # (tb, D) rows are live at any point.
        scores = []
        for i in range(2, n_rows):
            neg = x_ref[:, i, :].astype(jnp.float32)                       # (tb, D)
            scores.append(jnp.sum(anchor * neg, axis=-1, keepdims=True) - dot_ap)
        s = scores[0] if len(scores) == 1 else jnp.concatenate(scores, axis=-1)
        # Stabilized log(1 + sum_j exp(s_j)) -- identical value, overflow-safe.
        m = jnp.maximum(jnp.max(s, axis=-1, keepdims=True), 0.0)           # (tb, 1)
        expsum = jnp.sum(jnp.exp(s - m), axis=-1, keepdims=True)           # (tb, 1)
        loss = m + jnp.log(jnp.exp(-m) + expsum)                           # (tb, 1)
    else:
        # No negatives: log(1 + 0) == 0.
        loss = jnp.zeros_like(wsum)

    contrib = jnp.concatenate([loss, wsum], axis=-1)                       # (tb, 2)

    start = (c * nb + b) * tb
    needs_mask = start + tb > num_valid        # only the tail / clamped blocks

    @pl.when(jnp.logical_not(needs_mask))
    def _acc_full():
        out_ref[0] += contrib

    @pl.when(needs_mask)
    def _acc_masked():
        gidx = start + jax.lax.broadcasted_iota(jnp.int32, (tb, 2), 0)
        out_ref[0] += jnp.where(gidx < num_valid, contrib, 0.0)


def _detect_tpu(default_vmem=64 * 1024 * 1024):
    """Best-effort (vmem_capacity_bytes, tensorcores_per_chip) for the local chip."""
    vmem_cap = default_vmem          # conservative default (v7x-sized)
    num_cores = 1
    try:
        info = pltpu.get_tpu_info()
    except Exception:
        info = None
    if info is not None:
        cap = getattr(info, "vmem_capacity_bytes", None)
        if isinstance(cap, (int, float)) and cap > 0:
            vmem_cap = int(cap)
        for name in ("num_tensorcores", "tensorcores_per_chip", "num_cores", "core_count"):
            val = getattr(info, name, None)
            if isinstance(val, (int, float)) and val > 0:
                num_cores = int(val)
                break
    if num_cores <= 1:
        try:
            kind = jax.devices()[0].device_kind.lower()
            if "v7" in kind or "7x" in kind:      # v7x-class: 2 TensorCores / chip
                num_cores = 2
        except Exception:
            pass
    return vmem_cap, max(1, num_cores)


def _choose_tb(B, N, D, itemsize, vmem_limit, target_hbm_bytes):
    """Groups per block: ~target-sized HBM tile, bounded by the (padded) VMEM cost."""
    group_hbm = max(1, N * D * itemsize)
    sub = max(8, 32 // itemsize)                                  # sublane tile
    padded_n = ((N + sub - 1) // sub) * sub
    padded_d = ((D + 127) // 128) * 128
    group_vmem = padded_n * padded_d * itemsize                   # input tile / group in VMEM
    group_tmp = 4 * padded_d * 4                                  # ~4 live f32 (.,D) rows / group
    vmem_budget = (vmem_limit * 5) // 8                           # headroom for Mosaic scratch
    tb_hbm = target_hbm_bytes // group_hbm
    tb_vmem = vmem_budget // (2 * group_vmem + group_tmp)         # double-buffered input
    tb = min(tb_hbm, tb_vmem, 8192)
    tb = max(8, (tb // 8) * 8)
    if B <= tb:
        tb = B                                                    # single (exact) block
    # TODO(synk): for very large N*D (one group's rows overflowing the VMEM budget)
    # additionally tile the negatives axis with an online log-sum-exp accumulator.
    return max(1, tb)


def npair_loss_pallas(batch, l2=0.05, num_cores=None):
    """Pallas TPU implementation of NPairLoss.forward(batch).  batch: (B, N, D)."""
    B, N, D = batch.shape
    if N < 2:
        raise ValueError("NPairLoss needs at least an anchor and a positive (N >= 2).")
    itemsize = jnp.dtype(batch.dtype).itemsize

    vmem_cap, detected_cores = _detect_tpu()
    if num_cores is None:
        num_cores = detected_cores
    num_cores = max(1, min(int(num_cores), 2))

    # ~75% of physical VMEM (v7x only has 64 MiB per TensorCore).
    vmem_limit = max(32 * 1024 * 1024, (vmem_cap * 3) // 4)
    vmem_limit = int(min(vmem_limit, vmem_cap))
    # Bigger DMA tiles on high-bandwidth / small-VMEM (v7x-class) parts.
    target_hbm = 8 * 1024 * 1024 if vmem_cap <= 64 * 1024 * 1024 else 4 * 1024 * 1024

    tb = _choose_tb(B, N, D, itemsize, vmem_limit, target_hbm)
    nblocks = -(-B // tb)
    num_cores = max(1, min(num_cores, nblocks))
    nb = -(-nblocks // num_cores)
    last_block = nblocks - 1

    def x_index_map(c, b):
        # Fully out-of-range (tail-of-last-core) blocks are clamped onto the last
        # real block; their contribution is masked to zero inside the kernel.
        return (jnp.minimum(c * nb + b, last_block), 0, 0)

    kernel = functools.partial(_npair_loss_kernel, num_valid=B)

    partials = pl.pallas_call(
        kernel,
        out_shape=jax.ShapeDtypeStruct((num_cores, tb, 2), jnp.float32),
        grid_spec=pltpu.PrefetchScalarGridSpec(
            num_scalar_prefetch=0,
            grid=(num_cores, nb),
            # Native (B, N, D) layout: block over B only — no wrapper transpose/pad.
            # TODO(synk): if xprof still shows exposed DMA on v7x, add
            # pipeline_mode=pl.Buffered(3) here (VMEM headroom now exists).
            in_specs=[pl.BlockSpec((tb, N, D), x_index_map)],
            out_specs=pl.BlockSpec((1, tb, 2), lambda c, b: (c, 0, 0)),
        ),
        compiler_params=pltpu.CompilerParams(
            dimension_semantics=("parallel", "arbitrary"),
            vmem_limit_bytes=vmem_limit,
        ),
    )(batch)

    sums = jnp.sum(partials, axis=(0, 1))           # [sum_b loss_b, sum_b wsum_b]
    inv_b = jnp.float32(1.0 / B)
    return sums[0] * inv_b + jnp.float32(l2) * (sums[1] * inv_b)


def npair_loss_ref(batch, l2=0.05):
    """Pure-JAX reference mirroring the PyTorch module (no matmul-precision ambiguity)."""
    x = batch.astype(jnp.float32)
    anchor = x[:, 0, :]                                   # (B, D)
    positive = x[:, 1, :]                                 # (B, D)
    negatives = x[:, 2:, :]                               # (B, N-2, D)
    scores = jnp.sum(anchor[:, None, :] * (negatives - positive[:, None, :]), axis=-1)
    loss = jnp.log(1.0 + jnp.sum(jnp.exp(scores), axis=-1))          # (B,)
    wsum = jnp.sum(anchor ** 2 + positive ** 2, axis=-1)             # (B,)
    return jnp.mean(loss) + l2 * jnp.mean(wsum)


if __name__ == "__main__":
    # Small deterministic inputs: B=4 n-pair groups, N=8 rows each
    # (1 anchor + 1 positive + 6 negatives), embedding dim D=32.
    key = jax.random.PRNGKey(0)
    B, N, D = 4, 8, 32
    batch = 0.1 * jax.random.normal(key, (B, N, D), dtype=jnp.float32)

    out = npair_loss_pallas(batch, l2=0.05)
    out = jax.block_until_ready(out)

    ref = npair_loss_ref(batch, l2=0.05)
    assert jnp.allclose(out, ref, rtol=1e-5, atol=1e-5), (out, ref)

    print("KERNEL_OK")
</pallas_src>

<mosaic_0001>
module attributes {stable_mosaic.version = 11 : i64} {
  func.func @_npair_loss_kernel(%arg0: i32, %arg1: i32, %arg2: memref<4x8x32xf32, #tpu.memory_space<vmem>>, %arg3: memref<1x4x2xf32, #tpu.memory_space<vmem>>) attributes {dimension_semantics = [#tpu.dimension_semantics<parallel>, #tpu.dimension_semantics<arbitrary>], iteration_bounds = array<i64: 1, 1>, scalar_prefetch = 0 : i64, scratch_operands = 0 : i64, tpu.core_type = #tpu.core_type<tc>, window_params = [{transform_indices = @transform_0, window_bounds = array<i64: 4, 8, 32>}, {transform_indices = @transform_1, window_bounds = array<i64: 1, 4, 2>}]} {
    %c0_i32 = arith.constant 0 : i32
    %0 = arith.cmpi eq, %arg1, %c0_i32 : i32
    %1 = arith.extui %0 : i1 to i32
    %c0_i32_0 = arith.constant 0 : i32
    %2 = arith.cmpi ne, %1, %c0_i32_0 : i32
    scf.if %2 {
      %cst_32 = arith.constant 0.000000e+00 : f32
      %78 = vector.broadcast %cst_32 : f32 to vector<1x4x2xf32>
      %c0_33 = arith.constant 0 : index
      %c0_34 = arith.constant 0 : index
      %c0_35 = arith.constant 0 : index
      %79 = vector.load %arg3[%c0_33, %c0_34, %c0_35] : memref<1x4x2xf32, #tpu.memory_space<vmem>>, vector<1x4x2xf32>
      tpu.vector_store %arg3[%c0_33, %c0_34, %c0_35], %78 {strides = array<i32>} : memref<1x4x2xf32, #tpu.memory_space<vmem>>, vector<1x4x2xf32>,
    } else {
    }
    %c0 = arith.constant 0 : index
    %c0_1 = arith.constant 0 : index
    %c0_2 = arith.constant 0 : index
    %3 = vector.load %arg2[%c0, %c0_1, %c0_2] : memref<4x8x32xf32, #tpu.memory_space<vmem>>, vector<4x1x32xf32>
    %4 = vector.shape_cast %3 : vector<4x1x32xf32> to vector<4x32xf32>
    %c0_3 = arith.constant 0 : index
    %c1 = arith.constant 1 : index
    %c0_4 = arith.constant 0 : index
    %5 = vector.load %arg2[%c0_3, %c1, %c0_4] : memref<4x8x32xf32, #tpu.memory_space<vmem>>, vector<4x1x32xf32>
    %6 = vector.shape_cast %5 : vector<4x1x32xf32> to vector<4x32xf32>
    %7 = arith.mulf %4, %4 : vector<4x32xf32>
    %8 = arith.mulf %6, %6 : vector<4x32xf32>
    %9 = arith.addf %7, %8 : vector<4x32xf32>
    %cst = arith.constant dense<0.000000e+00> : vector<4xf32>
    %10 = vector.multi_reduction <add>, %9, %cst [1] : vector<4x32xf32> to vector<4xf32>
    %11 = vector.shape_cast %10 : vector<4xf32> to vector<4x1xf32>
    %12 = arith.mulf %4, %6 : vector<4x32xf32>
    %cst_5 = arith.constant dense<0.000000e+00> : vector<4xf32>
    %13 = vector.multi_reduction <add>, %12, %cst_5 [1] : vector<4x32xf32> to vector<4xf32>
    %14 = vector.shape_cast %13 : vector<4xf32> to vector<4x1xf32>
    %c0_6 = arith.constant 0 : index
    %c2 = arith.constant 2 : index
    %c0_7 = arith.constant 0 : index
    %15 = vector.load %arg2[%c0_6, %c2, %c0_7] : memref<4x8x32xf32, #tpu.memory_space<vmem>>, vector<4x1x32xf32>
    %16 = vector.shape_cast %15 : vector<4x1x32xf32> to vector<4x32xf32>
    %17 = arith.mulf %4, %16 : vector<4x32xf32>
    %cst_8 = arith.constant dense<0.000000e+00> : vector<4xf32>
    %18 = vector.multi_reduction <add>, %17, %cst_8 [1] : vector<4x32xf32> to vector<4xf32>
    %19 = vector.shape_cast %18 : vector<4xf32> to vector<4x1xf32>
    %20 = arith.subf %19, %14 : vector<4x1xf32>
    %c0_9 = arith.constant 0 : index
    %c3 = arith.constant 3 : index
    %c0_10 = arith.constant 0 : index
    %21 = vector.load %arg2[%c0_9, %c3, %c0_10] : memref<4x8x32xf32, #tpu.memory_space<vmem>>, vector<4x1x32xf32>
    %22 = vector.shape_cast %21 : vector<4x1x32xf32> to vector<4x32xf32>
    %23 = arith.mulf %4, %22 : vector<4x32xf32>
    %cst_11 = arith.constant dense<0.000000e+00> : vector<4xf32>
    %24 = vector.multi_reduction <add>, %23, %cst_11 [1] : vector<4x32xf32> to vector<4xf32>
    %25 = vector.shape_cast %24 : vector<4xf32> to vector<4x1xf32>
    %26 = arith.subf %25, %14 : vector<4x1xf32>
    %c0_12 = arith.constant 0 : index
    %c4 = arith.constant 4 : index
    %c0_13 = arith.constant 0 : index
    %27 = vector.load %arg2[%c0_12, %c4, %c0_13] : memref<4x8x32xf32, #tpu.memory_space<vmem>>, vector<4x1x32xf32>
    %28 = vector.shape_cast %27 : vector<4x1x32xf32> to vector<4x32xf32>
    %29 = arith.mulf %4, %28 : vector<4x32xf32>
    %cst_14 = arith.constant dense<0.000000e+00> : vector<4xf32>
    %30 = vector.multi_reduction <add>, %29, %cst_14 [1] : vector<4x32xf32> to vector<4xf32>
    %31 = vector.shape_cast %30 : vector<4xf32> to vector<4x1xf32>
    %32 = arith.subf %31, %14 : vector<4x1xf32>
    %c0_15 = arith.constant 0 : index
    %c5 = arith.constant 5 : index
    %c0_16 = arith.constant 0 : index
    %33 = vector.load %arg2[%c0_15, %c5, %c0_16] : memref<4x8x32xf32, #tpu.memory_space<vmem>>, vector<4x1x32xf32>
    %34 = vector.shape_cast %33 : vector<4x1x32xf32> to vector<4x32xf32>
    %35 = arith.mulf %4, %34 : vector<4x32xf32>
    %cst_17 = arith.constant dense<0.000000e+00> : vector<4xf32>
    %36 = vector.multi_reduction <add>, %35, %cst_17 [1] : vector<4x32xf32> to vector<4xf32>
    %37 = vector.shape_cast %36 : vector<4xf32> to vector<4x1xf32>
    %38 = arith.subf %37, %14 : vector<4x1xf32>
    %c0_18 = arith.constant 0 : index
    %c6 = arith.constant 6 : index
    %c0_19 = arith.constant 0 : index
    %39 = vector.load %arg2[%c0_18, %c6, %c0_19] : memref<4x8x32xf32, #tpu.memory_space<vmem>>, vector<4x1x32xf32>
    %40 = vector.shape_cast %39 : vector<4x1x32xf32> to vector<4x32xf32>
    %41 = arith.mulf %4, %40 : vector<4x32xf32>
    %cst_20 = arith.constant dense<0.000000e+00> : vector<4xf32>
    %42 = vector.multi_reduction <add>, %41, %cst_20 [1] : vector<4x32xf32> to vector<4xf32>
    %43 = vector.shape_cast %42 : vector<4xf32> to vector<4x1xf32>
    %44 = arith.subf %43, %14 : vector<4x1xf32>
    %c0_21 = arith.constant 0 : index
    %c7 = arith.constant 7 : index
    %c0_22 = arith.constant 0 : index
    %45 = vector.load %arg2[%c0_21, %c7, %c0_22] : memref<4x8x32xf32, #tpu.memory_space<vmem>>, vector<4x1x32xf32>
    %46 = vector.shape_cast %45 : vector<4x1x32xf32> to vector<4x32xf32>
    %47 = arith.mulf %4, %46 : vector<4x32xf32>
    %cst_23 = arith.constant dense<0.000000e+00> : vector<4xf32>
    %48 = vector.multi_reduction <add>, %47, %cst_23 [1] : vector<4x32xf32> to vector<4xf32>
    %49 = vector.shape_cast %48 : vector<4xf32> to vector<4x1xf32>
    %50 = arith.subf %49, %14 : vector<4x1xf32>
    %51 = tpu.concatenate %20, %26, %32, %38, %44, %50 in 1 : vector<4x1xf32>, vector<4x1xf32>, vector<4x1xf32>, vector<4x1xf32>, vector<4x1xf32>, vector<4x1xf32> -> vector<4x6xf32>
    %cst_24 = arith.constant dense<0xFF800000> : vector<4xf32>
    %52 = vector.multi_reduction <maximumf>, %51, %cst_24 [1] : vector<4x6xf32> to vector<4xf32>
    %53 = vector.shape_cast %52 : vector<4xf32> to vector<4x1xf32>
    %cst_25 = arith.constant 0.000000e+00 : f32
    %54 = vector.broadcast %cst_25 : f32 to vector<4x1xf32>
    %55 = arith.maximumf %53, %54 : vector<4x1xf32>
    %56 = vector.broadcast %55 : vector<4x1xf32> to vector<4x6xf32>
    %57 = arith.subf %51, %56 : vector<4x6xf32>
    %58 = math.exp %57 : vector<4x6xf32>
    %cst_26 = arith.constant dense<0.000000e+00> : vector<4xf32>
    %59 = vector.multi_reduction <add>, %58, %cst_26 [1] : vector<4x6xf32> to vector<4xf32>
    %60 = vector.shape_cast %59 : vector<4xf32> to vector<4x1xf32>
    %cst_27 = arith.constant 0.000000e+00 : f32
    %61 = vector.broadcast %cst_27 : f32 to vector<4x1xf32>
    %62 = arith.subf %61, %55 : vector<4x1xf32>
    %63 = math.exp %62 : vector<4x1xf32>
    %64 = arith.addf %63, %60 : vector<4x1xf32>
    %65 = math.log %64 : vector<4x1xf32>
    %66 = arith.addf %55, %65 : vector<4x1xf32>
    %67 = tpu.concatenate %66, %11 in 1 : vector<4x1xf32>, vector<4x1xf32> -> vector<4x2xf32>
    %c1_i32 = arith.constant 1 : i32
    %68 = arith.muli %arg0, %c1_i32 : i32
    %69 = arith.addi %68, %arg1 : i32
    %c4_i32 = arith.constant 4 : i32
    %70 = arith.muli %69, %c4_i32 : i32
    %c4_i32_28 = arith.constant 4 : i32
    %71 = arith.addi %70, %c4_i32_28 : i32
    %c4_i32_29 = arith.constant 4 : i32
    %72 = arith.cmpi sgt, %71, %c4_i32_29 : i32
    %true = arith.constant true
    %73 = arith.xori %72, %true : i1
    %74 = arith.extui %73 : i1 to i32
    %c0_i32_30 = arith.constant 0 : i32
    %75 = arith.cmpi ne, %74, %c0_i32_30 : i32
    scf.if %75 {
      %c0_32 = arith.constant 0 : index
      %c0_33 = arith.constant 0 : index
      %c0_34 = arith.constant 0 : index
      %78 = vector.load %arg3[%c0_32, %c0_33, %c0_34] : memref<1x4x2xf32, #tpu.memory_space<vmem>>, vector<1x4x2xf32>
      %79 = vector.shape_cast %78 : vector<1x4x2xf32> to vector<4x2xf32>
      %80 = arith.addf %79, %67 : vector<4x2xf32>
      %c0_35 = arith.constant 0 : index
      %c0_36 = arith.constant 0 : index
      %c0_37 = arith.constant 0 : index
      %81 = vector.load %arg3[%c0_35, %c0_36, %c0_37] : memref<1x4x2xf32, #tpu.memory_space<vmem>>, vector<1x4x2xf32>
      %82 = vector.shape_cast %81 : vector<1x4x2xf32> to vector<4x2xf32>
      %83 = vector.shape_cast %80 : vector<4x2xf32> to vector<1x4x2xf32>
      tpu.vector_store %arg3[%c0_35, %c0_36, %c0_37], %83 {strides = array<i32>} : memref<1x4x2xf32, #tpu.memory_space<vmem>>, vector<1x4x2xf32>,
    } else {
    }
    %76 = arith.extui %72 : i1 to i32
    %c0_i32_31 = arith.constant 0 : i32
    %77 = arith.cmpi ne, %76, %c0_i32_31 : i32
    scf.if %77 {
      %78 = tpu.iota {dimensions = array<i32: 0>} : vector<4x2xi32>
      %79 = vector.broadcast %70 : i32 to vector<4x2xi32>
      %80 = arith.addi %79, %78 : vector<4x2xi32>
      %c0_32 = arith.constant 0 : index
      %c0_33 = arith.constant 0 : index
      %c0_34 = arith.constant 0 : index
      %81 = vector.load %arg3[%c0_32, %c0_33, %c0_34] : memref<1x4x2xf32, #tpu.memory_space<vmem>>, vector<1x4x2xf32>
      %82 = vector.shape_cast %81 : vector<1x4x2xf32> to vector<4x2xf32>
      %c4_i32_35 = arith.constant 4 : i32
      %83 = vector.broadcast %c4_i32_35 : i32 to vector<4x2xi32>
      %84 = arith.cmpi slt, %80, %83 : vector<4x2xi32>
      %cst_36 = arith.constant 0.000000e+00 : f32
      %85 = vector.broadcast %cst_36 : f32 to vector<4x2xf32>
      %86 = arith.select %84, %67, %85 : vector<4x2xi1>, vector<4x2xf32>
      %87 = arith.addf %82, %86 : vector<4x2xf32>
      %c0_37 = arith.constant 0 : index
      %c0_38 = arith.constant 0 : index
      %c0_39 = arith.constant 0 : index
      %88 = vector.load %arg3[%c0_37, %c0_38, %c0_39] : memref<1x4x2xf32, #tpu.memory_space<vmem>>, vector<1x4x2xf32>
      %89 = vector.shape_cast %88 : vector<1x4x2xf32> to vector<4x2xf32>
      %90 = vector.shape_cast %87 : vector<4x2xf32> to vector<1x4x2xf32>
      tpu.vector_store %arg3[%c0_37, %c0_38, %c0_39], %90 {strides = array<i32>} : memref<1x4x2xf32, #tpu.memory_space<vmem>>, vector<1x4x2xf32>,
    } else {
    }
    return
  }
  func.func @transform_0(%arg0: i32, %arg1: i32) -> (i32, i32, i32) {
    %c1_i32 = arith.constant 1 : i32
    %0 = arith.muli %arg0, %c1_i32 : i32
    %1 = arith.addi %0, %arg1 : i32
    %c0_i32 = arith.constant 0 : i32
    %2 = arith.minsi %1, %c0_i32 : i32
    %c0_i32_0 = arith.constant 0 : i32
    %c0_i32_1 = arith.constant 0 : i32
    %c0_i32_2 = arith.constant 0 : i32
    return %2, %c0_i32_0, %c0_i32_1 : i32, i32, i32
  }
  func.func @transform_1(%arg0: i32, %arg1: i32) -> (i32, i32, i32) {
    %c0_i32 = arith.constant 0 : i32
    %c0_i32_0 = arith.constant 0 : i32
    %c0_i32_1 = arith.constant 0 : i32
    return %arg0, %c0_i32, %c0_i32_0 : i32, i32, i32
  }
}

</mosaic_0001>

<bundles_post_ra>
// kernel: tpu_custom_call.1
= control target key start
LH: loop header
LB: loop body
LE: loop exit
PB: predicated region body
PF: predicated region fallthrough
CT: control target
= control target key end

     0   :  { %6 = vsyncpa [#allocation3], 0  ;;  %s331_s9 = smov [#allocation2]   ;;  %s332_s11 = smov 128   ;;  %s459_s0 = inlined_call_operand.hbm [shape: f32[4,8,32], index: 0, kind: input, shape index: {}]   ;;  %s460_s1 = inlined_call_operand.vmem [shape: f32[1,4,2], index: 1, kind: output, shape index: {}]  }
   0x1   :  { %s17_s8 = sshll.u32 %s459_s0, 4  ;;  %s19_s10 = sshll.u32 %s331_s9, 4  ;;  %s18_s8 = int_to_ptr.hbm [resolvable:$true] %s17_s8  ;;  %s20_s10 = int_to_ptr.vmem [resolvable:$true] %s19_s10 }
   0x2   :  { %s333_s12 = smov 8  }
   0x3   :  { %25 = dma.hbm_to_vmem [thread:$0]  %s18_s8, 512, %s20_s10, [#allocation3], %s332_s11, %s332_s11, %s333_s12  }
   0x4   :  { %329 = dma.done.wait [#allocation3], 512  }
   0x5   :  { %330 = vsyncadd [#allocation3], 4294966784  ;;  %vm65_vm0 = vcmask 1041409   ;;  %vm68_vm1 = vcmask 1042434   ;;  %vm71_vm2 = vcmask 1043459   ;;  %vm74_vm3 = vcmask 257024  }
   0x6   :  { %v348_v0 = vld [vmem:[#allocation2] sm:$0x1]  ;;  %v350_v1 = vld [vmem:[#allocation2 + $0x8] sm:$0x1]  ;;  %v352_v2 = vld [vmem:[#allocation2 + $0x10] sm:$0x1] }
   0x7   :  { %v354_v3 = vld [vmem:[#allocation2 + $0x18] sm:$0x1]  ;;  %v165_v4 = vld [vmem:[#allocation2 + $0x5] sm:$0x1]  ;;  %v166_v5 = vld [vmem:[#allocation2 + $0xd] sm:$0x1] }
   0x8   :  { %v167_v6 = vld [vmem:[#allocation2 + $0x15] sm:$0x1]  ;;  %v168_v7 = vld [vmem:[#allocation2 + $0x1d] sm:$0x1]  ;;  %v169_v8 = vmul.f32 %v165_v4, %v348_v0  ;;  %v170_v9 = vmul.f32 %v166_v5, %v350_v1  ;;  %v119_v10 = vld [vmem:[#allocation2 + $0x3] sm:$0x1] }
   0x9   :  { %v171_v11 = vmul.f32 %v167_v6, %v352_v2  ;;  %v172_v12 = vmul.f32 %v168_v7, %v354_v3  ;;  %v120_v13 = vld [vmem:[#allocation2 + $0xb] sm:$0x1]  ;;  %v121_v14 = vld [vmem:[#allocation2 + $0x13] sm:$0x1]  ;;  %v122_v15 = vld [vmem:[#allocation2 + $0x1b] sm:$0x1]  ;;  %v123_v16 = vmul.f32 %v119_v10, %v348_v0 }
   0xa   :  { %v177_v17 = vrot.slane %v170_v9, 7  ;;  %v124_v18 = vmul.f32 %v120_v13, %v350_v1  ;;  %v125_v19 = vmul.f32 %v121_v14, %v352_v2  ;;  %v126_v20 = vmul.f32 %v122_v15, %v354_v3  ;;  %v364_v21 = vld [vmem:[#allocation2 + $0x1] sm:$0x1]  ;;  %v366_v22 = vld [vmem:[#allocation2 + $0x9] sm:$0x1] }
   0xb   :  { %v179_v23 = vrot.slane %v171_v11, 6  ;;  %v181_v24 = vrot.slane %v172_v12, 5  ;;  %v368_v25 = vld [vmem:[#allocation2 + $0x11] sm:$0x1]  ;;  %v370_v26 = vld [vmem:[#allocation2 + $0x19] sm:$0x1]  ;;  %v78_v33 = vmul.f32 %v364_v21, %v348_v0  ;;  %v79_v37 = vmul.f32 %v366_v22, %v350_v1 }
   0xc   :  { %v178_v27 = vsel %vm65_vm0, %v177_v17, %v169_v8  ;;  %v131_v28 = vrot.slane %v124_v18, 7  ;;  %v133_v29 = vrot.slane %v125_v19, 6  ;;  %v135_v30 = vrot.slane %v126_v20, 5  ;;  %v188_v31 = vld [vmem:[#allocation2 + $0x6] sm:$0x1] }
   0xd   :  { %v180_v32 = vsel %vm68_vm1, %v179_v23, %v178_v27  ;;  %v189_v34 = vld [vmem:[#allocation2 + $0xe] sm:$0x1]  ;;  %v80_v38 = vmul.f32 %v368_v25, %v352_v2  ;;  %v190_v39 = vld [vmem:[#allocation2 + $0x16] sm:$0x1]  ;;  %v191_v40 = vld [vmem:[#allocation2 + $0x1e] sm:$0x1]  ;;  %v81_v43 = vmul.f32 %v370_v26, %v354_v3  ;;  %v192_v44 = vmul.f32 %v188_v31, %v348_v0 }
   0xe   :  { %v182_v35 = vsel %vm71_vm2, %v181_v24, %v180_v32  ;;  %v132_v36 = vsel %vm65_vm0, %v131_v28, %v123_v16  ;;  %v142_v45 = vld [vmem:[#allocation2 + $0x4] sm:$0x1]  ;;  %v143_v46 = vld [vmem:[#allocation2 + $0xc] sm:$0x1]  ;;  %v86_v48 = vrot.slane %v79_v37, 7  ;;  %v193_v50 = vmul.f32 %v189_v34, %v350_v1 }
   0xf   :  { %v184_v41 = vsel %vm74_vm3, %v182_v35, 0.0  ;;  %v134_v42 = vsel %vm68_vm1, %v133_v29, %v132_v36  ;;  %v88_v49 = vrot.slane %v80_v38, 6  ;;  %v144_v51 = vld [vmem:[#allocation2 + $0x14] sm:$0x1]  ;;  %v90_v53 = vrot.slane %v81_v43, 5 }
  0x10   :  { %185 = vadd.xlane.f32.xlu2 %v184_v41  ;;  %v136_v47 = vsel %vm71_vm2, %v135_v30, %v134_v42  ;;  %v194_v54 = vmul.f32 %v190_v39, %v352_v2  ;;  %v195_v55 = vmul.f32 %v191_v40, %v354_v3  ;;  %v145_v56 = vld [vmem:[#allocation2 + $0x1c] sm:$0x1]  ;;  %v87_v57 = vsel %vm65_vm0, %v86_v48, %v78_v33  ;;  %v96_v61 = vld [vmem:[#allocation2 + $0x2] sm:$0x1]  ;;  %v97_v6 = vld [vmem:[#allocation2 + $0xa] sm:$0x1] }
  0x11   :  { %v138_v52 = vsel %vm74_vm3, %v136_v47, 0.0  ;;  %v200_v58 = vrot.slane %v193_v50, 7  ;;  %v146_v59 = vmul.f32 %v142_v45, %v348_v0  ;;  %v147_v60 = vmul.f32 %v143_v46, %v350_v1  ;;  %v98_v11 = vld [vmem:[#allocation2 + $0x12] sm:$0x1]  ;;  %v99_v12 = vld [vmem:[#allocation2 + $0x1a] sm:$0x1] }
  0x12   :  { %139 = vadd.xlane.f32.xlu1 %v138_v52  ;;  %v89_v62 = vsel %vm68_vm1, %v88_v49, %v87_v57  ;;  %v202_v63 = vrot.slane %v194_v54, 6  ;;  %v204_v4 = vrot.slane %v195_v55, 5  ;;  %v148_v5 = vmul.f32 %v144_v51, %v352_v2  ;;  %v211_v17 = vld [vmem:[#allocation2 + $0x7] sm:$0x1]  ;;  %v212_v18 = vld [vmem:[#allocation2 + $0xf] sm:$0x1] }
  0x13   :  { %v91_v7 = vsel %vm71_vm2, %v90_v53, %v89_v62  ;;  %v201_v8 = vsel %vm65_vm0, %v200_v58, %v192_v44  ;;  %v149_v9 = vmul.f32 %v145_v56, %v354_v3  ;;  %v154_v10 = vrot.slane %v147_v60, 7  ;;  %v213_v27 = vld [vmem:[#allocation2 + $0x17] sm:$0x1]  ;;  %v214_v32 = vld [vmem:[#allocation2 + $0x1f] sm:$0x1] }
  0x14   :  { %v93_v13 = vsel %vm74_vm3, %v91_v7, 0.0  ;;  %v203_v14 = vsel %vm68_vm1, %v202_v63, %v201_v8  ;;  %v156_v15 = vrot.slane %v148_v5, 6  ;;  %v100_v16 = vmul.f32 %v96_v61, %v348_v0 }
  0x15   :  { %94 = vadd.xlane.f32.xlu0 %v93_v13  ;;  %v205_v19 = vsel %vm71_vm2, %v204_v4, %v203_v14  ;;  %v155_v20 = vsel %vm65_vm0, %v154_v10, %v146_v59  ;;  %v158_v23 = vrot.slane %v149_v9, 5  ;;  %v101_v24 = vmul.f32 %v97_v6, %v350_v1 }
  0x16   :  { %v207_v28 = vsel %vm74_vm3, %v205_v19, 0.0  ;;  %v157_v29 = vsel %vm68_vm1, %v156_v15, %v155_v20  ;;  %v102_v30 = vmul.f32 %v98_v11, %v352_v2  ;;  %v103_v31 = vmul.f32 %v99_v12, %v354_v3 }
  0x17   :  { %v159_v33 = vsel %vm71_vm2, %v158_v23, %v157_v29  ;;  %v108_v34 = vrot.slane %v101_v24, 7  ;;  %v215_v35 = vmul.f32 %v211_v17, %v348_v0  ;;  %v216_v36 = vmul.f32 %v212_v18, %v350_v1 }
  0x18   :  { %208 = vadd.xlane.f32.xlu2 %v207_v28  ;;  %v161_v37 = vsel %vm74_vm3, %v159_v33, 0.0  ;;  %v110_v38 = vrot.slane %v102_v30, 6  ;;  %v112_v39 = vrot.slane %v103_v31, 5  ;;  %v217_v40 = vmul.f32 %v213_v27, %v352_v2 }
  0x19   :  { %v109_v41 = vsel %vm65_vm0, %v108_v34, %v100_v16  ;;  %v218_v42 = vmul.f32 %v214_v32, %v354_v3  ;;  %v223_v43 = vrot.slane %v216_v36, 7  ;;  %vm234_vm4 = vcmask 7168  }
  0x1a   :  { %162 = vadd.xlane.f32.xlu1 %v161_v37  ;;  %v111_v44 = vsel %vm68_vm1, %v110_v38, %v109_v41  ;;  %v225_v45 = vrot.slane %v217_v40, 6  ;;  %vm236_vm5 = vcmask 15360   ;;  %vm238_vm6 = vcmask 23552  }
  0x1b   :  { %v113_v46 = vsel %vm71_vm2, %v112_v39, %v111_v44  ;;  %v224_v47 = vsel %vm65_vm0, %v223_v43, %v215_v35  ;;  %v227_v48 = vrot.slane %v218_v42, 5  ;;  %vm240_vm7 = vcmask 31744  }
  0x1c   :  { %v115_v49 = vsel %vm74_vm3, %v113_v46, 0.0  ;;  %v226_v50 = vsel %vm68_vm1, %v225_v45, %v224_v47  ;;  %vm242_vm8 = vcmask 39936   ;;  %vm244_vm9 = vcmask 44032  }
  0x1d   :  { %116 = vadd.xlane.f32.xlu0 %v115_v49  ;;  %v228_v51 = vsel %vm71_vm2, %v227_v48, %v226_v50  ;;  %v52_v12 = vmul.f32 %v364_v21, %v364_v21  ;;  %v53_v13 = vmul.f32 %v366_v22, %v366_v22  ;;  %v54_v14 = vmul.f32 %v368_v25, %v368_v25 }
  0x1e   :  { %v230_v52 = vsel %vm74_vm3, %v228_v51, 0.0  ;;  %v55_v15 = vmul.f32 %v370_v26, %v370_v26  ;;  %v48_v16 = vmul.f32 %v348_v0, %v348_v0  ;;  %v49_v17 = vmul.f32 %v350_v1, %v350_v1 }
  0x1f   :  { %v50_v18 = vmul.f32 %v352_v2, %v352_v2  ;;  %v51_v21 = vmul.f32 %v354_v3, %v354_v3  ;;  %vm38_vm10 = vcmask 11264   ;;  %v334_v33 = vmov 0.0  }
  0x20   :  { %v56_v19 = vadd.f32 %v52_v12, %v48_v16  ;;  %v57_v22 = vadd.f32 %v53_v13, %v49_v17  ;;  %39 = vst.msk [vmem:[%s460_s1] sm:$0xf] %vm38_vm10, %v334_v33 }
  0x21   :  { %v58_v20 = vadd.f32 %v54_v14, %v50_v18  ;;  %v59_v23 = vadd.f32 %v55_v15, %v51_v21 }
  0x22   :  { %v64_v25 = vrot.slane %v57_v22, 7 }
  0x23   :  { %v67_v24 = vrot.slane %v58_v20, 6  ;;  %v70_v27 = vrot.slane %v59_v23, 5 }
  0x24   :  { %v66_v26 = vsel %vm65_vm0, %v64_v25, %v56_v19 }
  0x25   :  { %231 = vadd.xlane.f32.xlu0 %v230_v52  ;;  %v69_v0 = vsel %vm68_vm1, %v67_v24, %v66_v26 }
  0x26   :  { %v72_v28 = vsel %vm71_vm2, %v70_v27, %v69_v0 }
  0x27   :  { %v75_v1 = vsel %vm74_vm3, %v72_v28, 0.0  ;;  %v271_v43 = vld [vmem:[%s460_s1] sm:$0xf] }
  0x2d   :  { %76 = vadd.xlane.f32.xlu0 %v75_v1 }
  0x83   :  { %v186_v55 = vpop.xlane.xlu2 %185 }
  0x85   :  { %v140_v53 = vpop.xlane.xlu1 %139 }
  0x88   :  { %v95_v54 = vpop.xlane.xlu0 %94 }
  0x89   :  { %v141_v59 = vsub.f32 %v140_v53, %v95_v54  ;;  %v187_v4 = vsub.f32 %v186_v55, %v95_v54 }
  0x8b   :  { %v209_v63 = vpop.xlane.xlu2 %208 }
  0x8c   :  { %v210_v6 = vsub.f32 %v209_v63, %v95_v54 }
  0x8d   :  { %v163_v56 = vpop.xlane.xlu1 %162 }
  0x8e   :  { %v164_v57 = vsub.f32 %v163_v56, %v95_v54 }
  0x90   :  { %v117_v58 = vpop.xlane.xlu0 %116 }
  0x91   :  { %v118_v60 = vsub.f32 %v117_v58, %v95_v54 }
  0x93   :  { %v235_v61 = vsel %vm234_vm4, %v118_v60, %v141_v59 }
  0x94   :  { %v237_v62 = vsel %vm236_vm5, %v235_v61, %v164_v57 }
  0x95   :  { %v239_v5 = vsel %vm238_vm6, %v237_v62, %v187_v4 }
  0x96   :  { %v241_v9 = vsel %vm240_vm7, %v239_v5, %v210_v6 }
  0x98   :  { %v232_v7 = vpop.xlane.xlu0 %231 }
  0x99   :  { %v233_v8 = vsub.f32 %v232_v7, %v95_v54 }
  0x9b   :  { %v243_v10 = vsel %vm242_vm8, %v241_v9, %v233_v8 }
  0x9c   :  { %v245_v11 = vsel %vm244_vm9, %v243_v10, -inf }
  0x9d   :  { %246 = vmax.xlane.f32.xlu1 %v245_v11 }
  0xa0   :  { %v77_v41 = vpop.xlane.xlu0 %76 }
 0x110   :  { %v247_v2 = vpop.xlane.xlu1 %246 }
 0x111   :  { %v248_v29 = vmax.f32 %v247_v2, 0.0 }
 0x113   :  { %v249_v30 = vsub.f32 %v243_v10, %v248_v29  ;;  %v255_v34 = vsub.f32 0.0, %v248_v29 }
 0x115   :  { %v250_v3 = vmul.f32 1.442695, %v249_v30  ;;  %v256_v35 = vmul.f32 1.442695, %v255_v34 }
 0x117   :  { %299 = vpow2.f32 %v250_v3 }
 0x118   :  { %301 = vpow2.f32 %v256_v35 }
 0x11d   :  { %v300_v31 = vpop.eup %299 }
 0x11e   :  { %v252_v32 = vsel %vm244_vm9, %v300_v31, 0.0  ;;  %v302_v36 = vpop.eup %301 }
 0x11f   :  { %253 = vadd.xlane.f32.xlu2 %v252_v32 }
 0x192   :  { %v254_v37 = vpop.xlane.xlu2 %253 }
 0x193   :  { %v258_v38 = vadd.f32 %v302_v36, %v254_v37 }
 0x195   :  { %303 = vlog2.f32 %v258_v38 }
 0x19b   :  { %v304_v39 = vpop.eup %303 }
 0x19c   :  { %v260_v40 = vmul.f32 0.6931472, %v304_v39 }
 0x19e   :  { %v261_v42 = vadd.f32 %v260_v40, %v248_v29 }
 0x1a0   :  { %v262_v44 = vsel %vm234_vm4, %v261_v42, %v77_v41 }
 0x1a1   :  { %v272_v45 = vadd.f32 %v271_v43, %v262_v44 }
 0x1a3   :  { %274 = vst.msk [vmem:[%s460_s1] sm:$0xf] %vm38_vm10, %v272_v45 }
 0x1a4   :  { %292 = vsyncpa [#allocation3], 1 }

</bundles_post_ra>
